<compile_context>
chip_gen: v6e
topology: v6e:2x2x1
jax: 0.10.0
libtpu: 0.0.40
codegen_flags: <defaults>
</compile_context>

<pallas_src>
import functools

import jax
import jax.numpy as jnp
from jax import lax
from jax.experimental import pallas as pl
from jax.experimental.pallas import tpu as pltpu


def _label_smoothing_kernel(pred_ref, tgt_ref, out_ref, *,
                            confidence, smooth_val, total_n, tile_n):
    i = pl.program_id(0)

    x = pred_ref[...].astype(jnp.float32)                        # (TN, C)

    # Stable LSE.
    m = jnp.max(x, axis=-1, keepdims=True)                       # (TN, 1)
    lse = jnp.log(jnp.sum(jnp.exp(x - m), axis=-1, keepdims=True))

    # Single fused weighted lane reduction:
    #   w[r, c] = confidence        if c == target[r]
    #           = smooth_val        otherwise          (sum_c w = 1)
    #   row_loss = (m + lse) - sum_c w * x
    tgt = tgt_ref[...]                                           # (TN, 1) int32
    col = lax.broadcasted_iota(jnp.int32, x.shape, 1)            # (TN, C)
    w = jnp.where(col == tgt,
                  jnp.float32(confidence), jnp.float32(smooth_val))
    wsum = jnp.sum(w * x, axis=-1, keepdims=True)                # (TN, 1)

    row_loss = (m + lse) - wsum                                  # (TN, 1)

    # Mask padded rows of the (possibly partial) last tile.  Must stay a
    # select: out-of-bounds rows may contain inf/NaN from exp of garbage.
    row_ids = i * tile_n + lax.broadcasted_iota(jnp.int32, row_loss.shape, 0)
    row_loss = jnp.where(row_ids < total_n, row_loss, 0.0)

    partial = jnp.sum(row_loss)                                  # scalar
    # Lane-dense (1, 8, 128) block: one unmasked store per grid step.
    out_ref[...] = jnp.full(out_ref.shape, partial, dtype=out_ref.dtype)


def _choose_tile_n(n, c, itemsize, *,
                   vmem_budget_bytes=8 * 1024 * 1024,
                   max_tile=512, min_grid_steps=8):
    """Batch tile (rows): largest that fits a conservative VMEM budget,
    capped at 512 (HBM roofline) and capped so the grid keeps >= ~8 steps
    when N allows (v7x megacore + pipeline overlap).  Multiple of 16."""
    if n <= 16:
        return n
    # Per-row footprint: double-buffered pred block (native dtype) +
    # lane-padded (tile_n, 1) int32 target block (x2 buffers) + ~3 f32
    # (tile_n, C) temporaries inside the kernel body.
    per_row = c * (2 * itemsize + 3 * 4) + 2 * 128 * 4
    rows = vmem_budget_bytes // per_row
    rows = max(16, min(max_tile, (rows // 16) * 16))
    # Keep enough grid steps for both v7x TensorCores + DMA/compute overlap.
    per_step = -(-n // min_grid_steps)                 # cdiv
    per_step = max(16, ((per_step + 15) // 16) * 16)
    rows = min(rows, per_step)
    # Never larger than the (16-rounded) batch itself.
    rows = min(rows, ((n + 15) // 16) * 16)
    return max(16, rows)


def label_smoothing_loss(pred, target, *, classes, smoothing=0.0, tile_n=None):
    """pred: (N, C) float logits (f32 or bf16), target: (N,) int class ids.
    Returns the scalar mean label-smoothing loss (matches the PyTorch module;
    no ignore_index / padding-class handling)."""
    N, C = pred.shape
    assert C == classes
    itemsize = jnp.dtype(pred.dtype).itemsize
    if tile_n is None:
        tile_n = _choose_tile_n(N, C, itemsize)
    confidence = 1.0 - smoothing
    smooth_val = smoothing / (classes - 1)
    num_tiles = (N + tile_n - 1) // tile_n

    tgt2d = target.astype(jnp.int32).reshape(N, 1)

    kernel = functools.partial(
        _label_smoothing_kernel,
        confidence=confidence,
        smooth_val=smooth_val,
        total_n=N,
        tile_n=tile_n,
    )

    cost = pl.CostEstimate(
        flops=int(6 * N * C),
        transcendentals=int(N * C),
        bytes_accessed=int(N * C * itemsize + N * 4 + num_tiles * 8 * 128 * 4),
    )

    partials = pl.pallas_call(
        kernel,
        out_shape=jax.ShapeDtypeStruct((num_tiles, 8, 128), jnp.float32),
        grid_spec=pltpu.PrefetchScalarGridSpec(
            num_scalar_prefetch=0,
            grid=(num_tiles,),
            in_specs=[
                pl.BlockSpec((tile_n, C), lambda i: (i, 0)),
                pl.BlockSpec((tile_n, 1), lambda i: (i, 0)),
            ],
            out_specs=pl.BlockSpec((1, 8, 128), lambda i: (i, 0, 0)),
        ),
        compiler_params=pltpu.CompilerParams(
            dimension_semantics=("parallel",),
            vmem_limit_bytes=32 * 1024 * 1024,
        ),
        cost_estimate=cost,
    )(pred, tgt2d)

    # One scalar per tile (broadcast across the 8x128 block); pick lane 0.
    return jnp.sum(partials[:, 0, 0]) / jnp.float32(N)


def _reference(pred, target, *, classes, smoothing):
    logp = jax.nn.log_softmax(pred.astype(jnp.float32), axis=-1)
    confidence = 1.0 - smoothing
    true_dist = jnp.full_like(logp, smoothing / (classes - 1))
    onehot = jax.nn.one_hot(target, classes, dtype=logp.dtype)
    true_dist = true_dist * (1.0 - onehot) + confidence * onehot
    return jnp.mean(jnp.sum(-true_dist * logp, axis=-1))


if __name__ == "__main__":
    # Small demo shapes; N is deliberately NOT a multiple of the tile so the
    # remainder-masking path and the multi-tile grid are both exercised.
    N, C = 20, 128
    smoothing = 0.1

    key = jax.random.PRNGKey(0)
    k1, k2 = jax.random.split(key)
    pred = jax.random.normal(k1, (N, C), dtype=jnp.float32)
    target = jax.random.randint(k2, (N,), 0, C, dtype=jnp.int32)

    loss = label_smoothing_loss(pred, target, classes=C, smoothing=smoothing)
    loss = jax.block_until_ready(loss)

    ref = _reference(pred, target, classes=C, smoothing=smoothing)
    assert jnp.allclose(loss, ref, rtol=1e-5, atol=1e-5), (loss, ref)
    print("KERNEL_OK")
</pallas_src>

<mosaic_0001>
module attributes {stable_mosaic.version = 11 : i64} {
  func.func @_label_smoothing_kernel(%arg0: i32, %arg1: memref<16x128xf32, #tpu.memory_space<vmem>>, %arg2: memref<16x1xi32, #tpu.memory_space<vmem>>, %arg3: memref<1x8x128xf32, #tpu.memory_space<vmem>>) attributes {dimension_semantics = [#tpu.dimension_semantics<parallel>], iteration_bounds = array<i64: 2>, scalar_prefetch = 0 : i64, scratch_operands = 0 : i64, tpu.core_type = #tpu.core_type<tc>, window_params = [{transform_indices = @transform_0, window_bounds = array<i64: 16, 128>}, {transform_indices = @transform_1, window_bounds = array<i64: 16, 1>}, {transform_indices = @transform_2, window_bounds = array<i64: 1, 8, 128>}]} {
    %c0 = arith.constant 0 : index
    %c0_0 = arith.constant 0 : index
    %0 = vector.load %arg1[%c0, %c0_0] : memref<16x128xf32, #tpu.memory_space<vmem>>, vector<16x128xf32>
    %cst = arith.constant dense<0xFF800000> : vector<16xf32>
    %1 = vector.multi_reduction <maximumf>, %0, %cst [1] : vector<16x128xf32> to vector<16xf32>
    %2 = vector.shape_cast %1 : vector<16xf32> to vector<16x1xf32>
    %3 = vector.broadcast %2 : vector<16x1xf32> to vector<16x128xf32>
    %4 = arith.subf %0, %3 : vector<16x128xf32>
    %5 = math.exp %4 : vector<16x128xf32>
    %cst_1 = arith.constant dense<0.000000e+00> : vector<16xf32>
    %6 = vector.multi_reduction <add>, %5, %cst_1 [1] : vector<16x128xf32> to vector<16xf32>
    %7 = vector.shape_cast %6 : vector<16xf32> to vector<16x1xf32>
    %8 = math.log %7 : vector<16x1xf32>
    %c0_2 = arith.constant 0 : index
    %c0_3 = arith.constant 0 : index
    %9 = vector.load %arg2[%c0_2, %c0_3] : memref<16x1xi32, #tpu.memory_space<vmem>>, vector<16x1xi32>
    %10 = tpu.iota {dimensions = array<i32: 1>} : vector<16x128xi32>
    %11 = vector.broadcast %9 : vector<16x1xi32> to vector<16x128xi32>
    %12 = arith.cmpi eq, %10, %11 : vector<16x128xi32>
    %cst_4 = arith.constant 0.899999976 : f32
    %cst_5 = arith.constant 7.87401571E-4 : f32
    %13 = vector.broadcast %cst_4 : f32 to vector<16x128xf32>
    %14 = vector.broadcast %cst_5 : f32 to vector<16x128xf32>
    %15 = arith.select %12, %13, %14 : vector<16x128xi1>, vector<16x128xf32>
    %16 = arith.mulf %15, %0 : vector<16x128xf32>
    %cst_6 = arith.constant dense<0.000000e+00> : vector<16xf32>
    %17 = vector.multi_reduction <add>, %16, %cst_6 [1] : vector<16x128xf32> to vector<16xf32>
    %18 = vector.shape_cast %17 : vector<16xf32> to vector<16x1xf32>
    %19 = arith.addf %2, %8 : vector<16x1xf32>
    %20 = arith.subf %19, %18 : vector<16x1xf32>
    %c16_i32 = arith.constant 16 : i32
    %21 = arith.muli %arg0, %c16_i32 : i32
    %22 = tpu.iota {dimensions = array<i32: 0>} : vector<16x1xi32>
    %23 = vector.broadcast %21 : i32 to vector<16x1xi32>
    %24 = arith.addi %23, %22 : vector<16x1xi32>
    %c20_i32 = arith.constant 20 : i32
    %25 = vector.broadcast %c20_i32 : i32 to vector<16x1xi32>
    %26 = arith.cmpi slt, %24, %25 : vector<16x1xi32>
    %cst_7 = arith.constant 0.000000e+00 : f32
    %27 = vector.broadcast %cst_7 : f32 to vector<16x1xf32>
    %28 = arith.select %26, %20, %27 : vector<16x1xi1>, vector<16x1xf32>
    %29 = vector.shape_cast %28 : vector<16x1xf32> to vector<1x16x1xf32>
    %cst_8 = arith.constant dense<0.000000e+00> : vector<1xf32>
    %30 = vector.multi_reduction <add>, %29, %cst_8 [1, 2] : vector<1x16x1xf32> to vector<1xf32>
    %31 = vector.shape_cast %30 : vector<1xf32> to vector<1x1x1xf32>
    %32 = vector.extract %31[0, 0, 0] : f32 from vector<1x1x1xf32>
    %33 = vector.broadcast %32 : f32 to vector<1x8x128xf32>
    %c0_9 = arith.constant 0 : index
    %c0_10 = arith.constant 0 : index
    %c0_11 = arith.constant 0 : index
    %34 = vector.load %arg3[%c0_9, %c0_10, %c0_11] : memref<1x8x128xf32, #tpu.memory_space<vmem>>, vector<1x8x128xf32>
    tpu.vector_store %arg3[%c0_9, %c0_10, %c0_11], %33 {strides = array<i32>} : memref<1x8x128xf32, #tpu.memory_space<vmem>>, vector<1x8x128xf32>,
    return
  }
  func.func @transform_0(%arg0: i32) -> (i32, i32) {
    %c0_i32 = arith.constant 0 : i32
    %c0_i32_0 = arith.constant 0 : i32
    return %arg0, %c0_i32 : i32, i32
  }
  func.func @transform_1(%arg0: i32) -> (i32, i32) {
    %c0_i32 = arith.constant 0 : i32
    %c0_i32_0 = arith.constant 0 : i32
    return %arg0, %c0_i32 : i32, i32
  }
  func.func @transform_2(%arg0: i32) -> (i32, i32, i32) {
    %c0_i32 = arith.constant 0 : i32
    %c0_i32_0 = arith.constant 0 : i32
    %c0_i32_1 = arith.constant 0 : i32
    return %arg0, %c0_i32, %c0_i32_0 : i32, i32, i32
  }
}

</mosaic_0001>

<bundles_post_ra>
// kernel: tpu_custom_call.1
= control target key start
LH: loop header
LB: loop body
LE: loop exit
PB: predicated region body
PF: predicated region fallthrough
CT: control target
= control target key end

     0   :  { %7 = vsyncpa [#allocation3], 0  ;;  %s604_s0 = inlined_call_operand.vmem [shape: f32[20,128], index: 0, kind: input, shape index: {}]   ;;  %s605_s1 = inlined_call_operand.vmem [shape: s32[20,1], index: 1, kind: input, shape index: {}]   ;;  %s606_s2 = inlined_call_operand.hbm [shape: f32[2,8,128], index: 2, kind: output, shape index: {}]  }
   0x1   :  { %9 = vsyncpa [#allocation3 + $0x1], 0  ;;  %s508_s9 = smov 0   ;;  %s510_s10 = smov 0  }
   0x2   :  { %s512_s11 = smov 0   ;;  %s514_s12 = smov 0  }
   0x3 LB: > { %s529_s13 = sadd.s32 4294967295, %s488_s12   ;;  %s361_s14 = sadd.s32 4294967294, %s488_s12   ;;  %s488_s12 = sphi %s514_s12, %s612_s12   ;;  %s484_s11 = sphi %s512_s11, %s611_s11   ;;  %s480_s10 = sphi %s510_s10, %s610_s10   ;;  %s476_s9 = sphi %s508_s9, %s609_s9  }
   0x4   : > { %s533_s15 = sadd.s32 1, %s488_s12   ;;  %s74_s16 = sadd.s32 1, %s484_s11 }
   0x5   : > { %s71_s17 = ssub.s32 %s488_s12, %s533_s15  ;;  %p84_p0 = scmp.ne.s32.totalorder %s484_s11, %s480_s10 }
   0x6   : > { %p72_p1 = scmp.eq.s32.totalorder %s71_s17, 0  ;;  %p85_p2 = scmp.eq.s32.totalorder %s529_s13, 1 }
   0x7   : > { %p90_p3 = scmp.ne.s32.totalorder %s480_s10, %s476_s9  ;;  %p91_p4 = scmp.eq.s32.totalorder %s361_s14, 1 }
   0x8   : > { %s544_s18 = scalar_select %p72_p1, %s484_s11, %s74_s16  }
   0x9   : > { %p546_p5 = por %p85_p2, %p84_p0  ;;  %p550_p6 = por %p91_p4, %p90_p3 }
   0xa   : > { %p364_p7 = scmp.ge.s32.totalorder %s488_s12, 1  ;;  %p143_p8 = scmp.lt.s32.totalorder %s488_s12, 3 }
   0xc   : > { %p144_p9 = pnand %p364_p7, %p143_p8 }
   0xd   : > { %s366_s21 = sshll.u32 (!%p144_p9), %s529_s13, 1  ;;  %s370_s29 = sshll.u32 (!%p144_p9), %s529_s13, 4 }
   0xe   : > { %147 = sbr.rel (%p144_p9) target bundleno = 559 (0x22f), region = 28  ;;  %p183_p10 = scmp.lt.s32.totalorder (!%p144_p9), %s366_s21, 2 }
   0xf   : > { %s175_s30 = sand.u32 (!%p144_p9), 1, %s480_s10   ;;  %s372_s6 = sshll.u32 (!%p144_p9), %s529_s13, 7 }
  0x10   : > { %s365_s3 = sshll.u32 (!%p144_p9), %s175_s30, 3  ;;  %s288_s16 = scalar_lea.hbm (!%p144_p9), %s606_s2, %s372_s6 }
  0x11   : > { %s177_s4 = scalar_lea.vmem (!%p144_p9), [#allocation2], %s365_s3  ;;  %s277_s17 = scalar_lea.sflag (!%p144_p9), [#allocation3], %s175_s30 }
  0x12   : > { %s290_s5 = sshll.u32 (!%p144_p9), %s177_s4, 4  ;;  %s566_s5 = int_to_ptr.vmem [resolvable:$true] %s290_s5 }
  0x13   : > { %v490_v0 = vmov 0   ;;  %s614_s21 = smov (!%p183_p10, %s366_s21), 2  ;;  %v228_v10 = vlaneseq  ;;  %v491_v15 = vmov 0.0007874016   ;;  %v254_v25 = vstv %s370_s29 }
  0x14   : > { %418 = vset.pattern.permute.xlu1 %v490_v0  ;;  %419 = vset.pattern.permute.xlu0 %v490_v0  ;;  %s367_s22 = sshll.u32 %s614_s21, 3  ;;  %vm261_vm4 = vcmask 7168   ;;  %s428_s21 = scalar_lea.vmem %s566_s5, 128 }
  0x15   : > { %s186_s25 = scalar_lea.vmem %s604_s0, %s367_s22  ;;  %s200_s28 = scalar_lea.vmem %s605_s1, %s367_s22  ;;  %v229_v13 = vand.u32 127, %v228_v10  ;;  %v252_v24 = vshrl.u32 %v228_v10, 7 }
  0x16   : > { %v206_v1 = vld [vmem:[%s186_s25] sm:$0xff]  ;;  %v207_v3 = vld [vmem:[%s186_s25 + $0x8] sm:$0xff]  ;;  %p429_p11 = scmp.ne.s32.totalorder %s566_s5, %s428_s21  ;;  %s492_s22 = smov [#allocation2]  }
  0x17   : > { %v226_v2 = vld [vmem:[%s200_s28] sm:$0xff]  ;;  %208 = vmax.xlane.f32.xlu0 %v206_v1  ;;  %v227_v4 = vld [vmem:[%s200_s28 + $0x8] sm:$0xff]  ;;  %v253_v27 = vadd.s32 8, %v252_v24  ;;  %v255_v29 = vadd.s32 %v254_v25, %v252_v24  ;;  %s432_s13 = sshll.u32 %s492_s22, 4  ;;  %s433_s13 = int_to_ptr.vmem [resolvable:$false] %s432_s13 }
  0x18   : > { %231 = vperm.xlu1 %418, %v226_v2   ;;  %p430_p12 = pnand %p429_p11, %p546_p5  ;;  %s434_s23 = scalar_lea.vmem %s433_s13, 256 }
  0x19   : > { %v256_v33 = vadd.s32 %v254_v25, %v253_v27  ;;  %vm257_vm2 = vcmp.lt.s32.totalorder %v255_v29, 20  ;;  %p435_p0 = scmp.lt.s32.totalorder %s566_s5, %s433_s13  ;;  %p436_p1 = scmp.lt.s32.totalorder %s434_s23, %s428_s21 }
  0x1a   : > { %p431_p13 = pneg %p430_p12 }
  0x1b   : > { %210 = vmax.xlane.f32.xlu0 %v207_v3  ;;  %vm258_vm3 = vcmp.lt.s32.totalorder %v256_v33, 20  ;;  %p437_p2 = por %p436_p1, %p435_p0 }
  0x1c   : > { %234 = vperm.xlu1 %418, %v227_v4  }
  0x1d   : > { %p438_p3 = pnand %p437_p2, %p431_p13 }
  0x93   : > { %v232_v12 = vpop.permute.xlu1 %231 }
  0x94   : > { %vm236_vm0 = vcmp.eq.s32.totalorder %v229_v13, %v232_v12 }
  0x95   : > { %v238_v16 = vsel %vm236_vm0, 0.9, %v491_v15 }
  0x96   : > { %v240_v18 = vmul.f32 %v238_v16, %v206_v1 }
  0x97   : > { %v235_v14 = vpop.permute.xlu1 %234 }
  0x98   : > { %vm237_vm1 = vcmp.eq.s32.totalorder %v229_v13, %v235_v14 }
  0x99   : > { %v239_v19 = vsel %vm237_vm1, 0.9, %v491_v15 }
  0x9a   : > { %v241_v21 = vmul.f32 %v239_v19, %v207_v3 }
  0xa0   : > { %v209_v5 = vpop.xlane.xlu0 %208 }
  0xa1   : > { %v212_v6 = vsub.f32 %v206_v1, %v209_v5 }
  0xa3   : > { %v214_v7 = vmul.f32 1.442695, %v212_v6 }
  0xa4   : > { %v211_v8 = vpop.xlane.xlu0 %210 }
  0xa5   : > { %420 = vpow2.f32 %v214_v7  ;;  %v213_v9 = vsub.f32 %v207_v3, %v211_v8 }
  0xa7   : > { %v216_v11 = vmul.f32 1.442695, %v213_v9 }
  0xa9   : > { %422 = vpow2.f32 %v216_v11 }
  0xb2   : > { %v421_v17 = vpop.eup %420 }
  0xb3   : > { %218 = vadd.xlane.f32.xlu0 %v421_v17 }
  0xb6   : > { %v423_v20 = vpop.eup %422 }
  0xb7   : > { %220 = vadd.xlane.f32.xlu1 %v423_v20  ;;  %242 = vadd.xlane.f32.xlu0 %v240_v18 }
  0xbb   : > { %244 = vadd.xlane.f32.xlu0 %v241_v21 }
 0x13c   : > { %v219_v22 = vpop.xlane.xlu0 %218 }
 0x13d   : > { %424 = vlog2.f32 %v219_v22 }
 0x140   : > { %v221_v23 = vpop.xlane.xlu1 %220  ;;  %v243_v30 = vpop.xlane.xlu0 %242 }
 0x141   : > { %426 = vlog2.f32 %v221_v23 }
 0x144   : > { %v245_v37 = vpop.xlane.xlu0 %244 }
 0x14a   : > { %v425_v26 = vpop.eup %424 }
 0x14b   : > { %v223_v28 = vmul.f32 0.6931472, %v425_v26 }
 0x14d   : > { %v246_v31 = vadd.f32 %v223_v28, %v209_v5 }
 0x14e   : > { %v427_v32 = vpop.eup %426 }
 0x14f   : > { %v225_v34 = vmul.f32 0.6931472, %v427_v32  ;;  %v248_v35 = vsub.f32 %v246_v31, %v243_v30 }
 0x151   : > { %v247_v36 = vadd.f32 %v225_v34, %v211_v8  ;;  %v259_v38 = vsel %vm257_vm2, %v248_v35, 0.0 }
 0x152   : > { %v262_v41 = vsel %vm261_vm4, %v259_v38, 0.0 }
 0x153   : > { %v249_v39 = vsub.f32 %v247_v36, %v245_v37 }
 0x155   : > { %v260_v40 = vsel %vm258_vm3, %v249_v39, 0.0 }
 0x156   : > { %v263_v42 = vsel %vm261_vm4, %v260_v40, 0.0 }
 0x157   : > { %v264_v43 = vadd.f32 %v263_v42, %v262_v41 }
 0x159   : > { %265 = vadd.xlane.f32.xlu0 %v264_v43 }
 0x1e2   : > { %v266_v44 = vpop.xlane.xlu0 %265 }
 0x1e3   : > { %v267_v45 = vrot.slane %v266_v44, 4 }
 0x1e5   : > { %v268_v46 = vadd.f32 %v267_v45, %v266_v44 }
 0x1e7   : > { %v269_v47 = vrot.slane %v268_v46, 2 }
 0x1e9   : > { %v270_v48 = vadd.f32 %v269_v47, %v268_v46 }
 0x1eb   : > { %v271_v49 = vrot.slane %v270_v48, 1 }
 0x1ed   : > { %v272_v50 = vadd.f32 %v271_v49, %v270_v48 }
 0x1ef   : > { %375 = vpush %v272_v50 }
 0x220   : > { %s376_s7 = spop %375 }
 0x221   : > { %v274_v51 = vstv %s376_s7 }
 0x222   : > { %275 = vst [vmem:[%s177_s4] sm:$0xff] %v274_v51 }
 0x223   : > { %441 = shalt.err (!%p438_p3)
}
 0x224   : > { %s442_s24 = scalar_lea.hbm %s288_s16, 128  ;;  %s446_s27 = scalar_lea.hbm %s606_s2, 256 }
 0x225   : > { %p443_p4 = scmp.ne.s32.totalorder %s288_s16, %s442_s24  ;;  %p447_p9 = scmp.lt.s32.totalorder %s288_s16, %s606_s2 }
 0x226   : > { %p448_p10 = scmp.lt.s32.totalorder %s446_s27, %s442_s24 }
 0x227   : > { %p444_p7 = pnand %p443_p4, %p546_p5 }
 0x228   : > { %p449_p11 = por %p448_p10, %p447_p9 }
 0x229   : > { %p445_p8 = pneg %p444_p7 }
 0x22b   : > { %p450_p12 = pnand %p449_p11, %p445_p8 }
 0x22d   : > { %453 = shalt.err (!%p450_p12)
}
 0x22e   : > { %377 = dma.vmem_to_hbm [thread:$0]  (%p546_p5), %s566_s5, 128, %s288_s16, %s277_s17  }
 0x22f PF: > { %p383_p13 = scmp.ge.s32.totalorder %s488_s12, 2  ;;  %s302_s30 = sand.u32 1, %s476_s9  }
 0x230   : > { %s303_s3 = scalar_lea.sflag [#allocation3], %s302_s30 }
 0x231   : > { %p380_p0 = pnand %p383_p13, %p550_p6 }
 0x233   : > { %p381_p1 = pneg %p380_p0 }
 0x235   : > { %471 = dma.done.wait (%p381_p1), %s303_s3, 128  }
 0x236   : > { %473 = vsyncadd (%p381_p1), %s303_s3, 4294967168  ;;  %p12_p2 = scmp.ge.s32.totalorder %s533_s15, 4   ;;  %s609_s9 = smov %s480_s10 }
 0x237   : > { %s610_s10 = smov %s484_s11  ;;  %s611_s11 = smov %s544_s18 }
 0x238   : > { %s612_s12 = smov %s533_s15  ;;  %14 = sbr.rel (!%p12_p2) target bundleno = 3 (0x3), region = 66 }
 0x23d   :  { %308 = vsyncpa [#allocation3], 1 }
 0x23e   :  { %310 = vsyncpa [#allocation3 + $0x1], 1 }

</bundles_post_ra>
